<compile_context>
chip_gen: v6e
topology: v6e:2x2x1
jax: 0.10.0
libtpu: 0.0.40
codegen_flags: <defaults>
</compile_context>

<pallas_src>
import functools
import math

import jax
import jax.numpy as jnp
from jax import lax
from jax.experimental import pallas as pl
from jax.experimental.pallas import tpu as pltpu


# Scoped-VMEM cap: > default (16 MiB v5e / 32 MiB v6e,v7x), < v7x's 64 MiB physical.
_VMEM_LIMIT = 48 * 1024 * 1024
# TODO(synk): on v5e shrink tile targets to (256, 256, 512) and lean harder on traffic
# reduction (0.8 TB/s HBM, 16 MiB default scoped VMEM).
_TM_TARGET, _TN_TARGET, _TK_TARGET = 512, 512, 1024


# ------------------------------- tiling helper ------------------------------ #

def _pick_tile(dim, target, align):
    """Largest t <= target with t % align == 0 and dim % t == 0; else the full dim."""
    if dim <= target:
        return dim
    t = (min(target, dim) // align) * align
    while t >= align:
        if dim % t == 0:
            return t
        t -= align
    return dim


# --------------------- fused LayerNorm + linear (+GELU) ---------------------- #
# Grid (M/tm, Cout/tn); the LN'd bf16 x tile is computed once (inner j == 0) and cached
# in VMEM scratch, then reused for every column tile of the same row tile.

def _make_ln_linear_kernel(do_gelu, ln_eps=1e-5):
    def kernel(x_ref, g_ref, bln_ref, w_ref, b_ref, o_ref, xln_scr):
        @pl.when(pl.program_id(1) == 0)
        def _():
            xf = x_ref[...].astype(jnp.float32)
            mu = jnp.mean(xf, axis=-1, keepdims=True)
            xc = xf - mu
            var = jnp.mean(xc * xc, axis=-1, keepdims=True)
            xln = xc * lax.rsqrt(var + ln_eps) * g_ref[...] + bln_ref[...]
            xln_scr[...] = xln.astype(jnp.bfloat16)

        acc = jnp.dot(xln_scr[...], w_ref[...], preferred_element_type=jnp.float32)
        acc = acc + b_ref[...]
        if do_gelu:
            # tanh-form GELU (difference vs exact erf GELU is <~3e-3).
            acc = jax.nn.gelu(acc, approximate=True)
        o_ref[...] = acc.astype(o_ref.dtype)
    return kernel


def pallas_ln_linear(x_f32, gamma, beta, w_t_bf16, b, *, gelu=False,
                     out_dtype=jnp.bfloat16, tm_target=_TM_TARGET, tn_target=_TN_TARGET):
    """out = [gelu](LayerNorm(x_f32) @ w_t + b), tiled over (M/tm, Cout/tn)."""
    M, Cin = x_f32.shape
    Cout = w_t_bf16.shape[1]
    tm = _pick_tile(M, tm_target, 16)
    tn = _pick_tile(Cout, tn_target, 128)
    grid = (M // tm, Cout // tn)

    in_specs = [
        pl.BlockSpec((tm, Cin), lambda i, j: (i, 0)),   # constant over j -> no re-DMA
        pl.BlockSpec((1, Cin), lambda i, j: (0, 0)),
        pl.BlockSpec((1, Cin), lambda i, j: (0, 0)),
        pl.BlockSpec((Cin, tn), lambda i, j: (0, j)),
        pl.BlockSpec((1, tn), lambda i, j: (0, j)),
    ]
    return pl.pallas_call(
        _make_ln_linear_kernel(gelu),
        out_shape=jax.ShapeDtypeStruct((M, Cout), out_dtype),
        grid=grid,
        in_specs=in_specs,
        out_specs=pl.BlockSpec((tm, tn), lambda i, j: (i, j)),
        scratch_shapes=[pltpu.VMEM((tm, Cin), jnp.bfloat16)],
        compiler_params=pltpu.CompilerParams(
            dimension_semantics=("parallel", "arbitrary"),   # scratch carried across j
            vmem_limit_bytes=_VMEM_LIMIT),
    )(x_f32, gamma.reshape(1, Cin), beta.reshape(1, Cin), w_t_bf16, b.reshape(1, Cout))


# -------------------- K-tiled bf16 linear (+residual/+GELU) ------------------ #
# Grid (M/tm, Cout/tn, Cin/tk) with an f32 VMEM accumulator: bounds per-step VMEM even
# when Cin = 4C (fc2), keeping tm/tn large and the pipeline 2-deep.

def _ktiled_body(x_ref, w_ref, b_ref, r_ref, o_ref, acc_scr, do_gelu):
    k = pl.program_id(2)

    @pl.when(k == 0)
    def _():
        acc_scr[...] = jnp.zeros_like(acc_scr)

    acc_scr[...] += jnp.dot(x_ref[...], w_ref[...], preferred_element_type=jnp.float32)

    @pl.when(k == pl.num_programs(2) - 1)
    def _():
        acc = acc_scr[...] + b_ref[...]
        if do_gelu:
            acc = jax.nn.gelu(acc, approximate=True)
        if r_ref is not None:
            acc = acc + r_ref[...].astype(jnp.float32)
        o_ref[...] = acc.astype(o_ref.dtype)


def _make_ktiled_linear_kernel(do_gelu, do_residual):
    if do_residual:
        def kernel(x_ref, w_ref, b_ref, r_ref, o_ref, acc_scr):
            _ktiled_body(x_ref, w_ref, b_ref, r_ref, o_ref, acc_scr, do_gelu)
    else:
        def kernel(x_ref, w_ref, b_ref, o_ref, acc_scr):
            _ktiled_body(x_ref, w_ref, b_ref, None, o_ref, acc_scr, do_gelu)
    return kernel


def pallas_linear_bf16(x_bf16, w_t_bf16, b, *, gelu=False, residual=None,
                       out_dtype=jnp.float32, tm_target=_TM_TARGET,
                       tn_target=_TN_TARGET, tk_target=_TK_TARGET):
    """out = [residual +] [gelu](x_bf16 @ w_t + b), K-tiled with an f32 accumulator."""
    M, Cin = x_bf16.shape
    Cout = w_t_bf16.shape[1]
    tm = _pick_tile(M, tm_target, 16)
    tn = _pick_tile(Cout, tn_target, 128)
    tk = _pick_tile(Cin, tk_target, 128)
    grid = (M // tm, Cout // tn, Cin // tk)

    in_specs = [
        pl.BlockSpec((tm, tk), lambda i, j, k: (i, k)),
        pl.BlockSpec((tk, tn), lambda i, j, k: (k, j)),
        pl.BlockSpec((1, tn), lambda i, j, k: (0, j)),
    ]
    args = [x_bf16, w_t_bf16, b.reshape(1, Cout)]
    if residual is not None:
        in_specs.append(pl.BlockSpec((tm, tn), lambda i, j, k: (i, j)))
        args.append(residual)

    return pl.pallas_call(
        _make_ktiled_linear_kernel(gelu, residual is not None),
        out_shape=jax.ShapeDtypeStruct((M, Cout), out_dtype),
        grid=grid,
        in_specs=in_specs,
        out_specs=pl.BlockSpec((tm, tn), lambda i, j, k: (i, j)),
        scratch_shapes=[pltpu.VMEM((tm, tn), jnp.float32)],
        compiler_params=pltpu.CompilerParams(
            dimension_semantics=("parallel", "parallel", "arbitrary"),
            vmem_limit_bytes=_VMEM_LIMIT),
    )(*args)


# ------------------------------ causal attention ----------------------------- #

def _attn_kernel(qkv_ref, o_ref, *, n_head, scale):
    # qkv_ref: (T, C) bf16 — the shared q = k = v slab for this batch element.
    # o_ref:   (tq, C)     — one q-tile of the output, stored lane-dense in one shot.
    T, C = qkv_ref.shape
    tq = o_ref.shape[0]
    hd = C // n_head

    qi = pl.program_id(1)
    q_start = pl.multiple_of(qi * tq, tq)
    n_kv = qi + 1                       # causal: only kv blocks up to/including the diagonal

    # Block-relative causal mask indices, hoisted out of the head / kv loops.
    row = q_start + lax.broadcasted_iota(jnp.int32, (tq, tq), 0)
    col = lax.broadcasted_iota(jnp.int32, (tq, tq), 1)

    head_outs = []
    # TODO(synk): for n_head >> 8 switch this static unroll to lax.fori_loop with
    # pl.ds(h*hd, hd) head offsets to bound vreg live ranges.
    for h in range(n_head):
        lo = h * hd
        q_h = qkv_ref[pl.ds(q_start, tq), pl.ds(lo, hd)]        # (tq, hd), read from the ref

        def kv_step(j, carry):
            m, l, acc = carry
            kv_start = pl.multiple_of(j * tq, tq)
            k_h = qkv_ref[pl.ds(kv_start, tq), pl.ds(lo, hd)]   # (tq, hd) == v_h
            s = lax.dot_general(q_h, k_h, (((1,), (1,)), ((), ())),
                                preferred_element_type=jnp.float32) * scale
            s = jnp.where(row >= kv_start + col, s, -jnp.inf)
            m_new = jnp.maximum(m, jnp.max(s, axis=-1, keepdims=True))
            alpha = jnp.exp(m - m_new)
            # TODO(synk): on v6e/v7x (bf16 EUP) a bf16 exp here roughly doubles EUP throughput
            # if attention turns out EUP-bound at hd=64.
            p = jnp.exp(s - m_new)                               # unnormalized probabilities
            l_new = alpha * l + jnp.sum(p, axis=-1, keepdims=True)
            acc_new = alpha * acc + jnp.dot(p.astype(jnp.bfloat16), k_h,
                                            preferred_element_type=jnp.float32)
            return m_new, l_new, acc_new

        m0 = jnp.full((tq, 1), -jnp.inf, jnp.float32)
        l0 = jnp.zeros((tq, 1), jnp.float32)
        a0 = jnp.zeros((tq, hd), jnp.float32)
        m, l, acc = lax.fori_loop(0, n_kv, kv_step, (m0, l0, a0))
        # Normalize AFTER the PV matmul: (tq, hd) multiply instead of (tq, T).
        head_outs.append(acc * pl.reciprocal(l, approx=True))

    # Single lane-dense store of the full (tq, C) tile (no per-head masked sub-lane stores).
    o_ref[...] = jnp.concatenate(head_outs, axis=-1).astype(o_ref.dtype)
    # TODO(synk): for very long T on v7x, stream kv blocks from HBM (pl.ANY + manual
    # double-buffered DMA) instead of holding the full (T, C) slab in VMEM; optionally
    # fuse the proj matmul (+ residual) into this epilogue on v5e/v6e.


def pallas_causal_attention(qkv, n_head, *, tq_target=256):
    """qkv: (B, T, C) bf16 (q = k = v) -> attention output in the same (B, T, C) layout."""
    B, T, C = qkv.shape
    hd = C // n_head
    tq = _pick_tile(T, tq_target, 16)
    n_q = T // tq
    kernel = functools.partial(_attn_kernel, n_head=n_head, scale=1.0 / math.sqrt(hd))

    def build(single_buffer_kv):
        kv_kwargs = {}
        if single_buffer_kv and hasattr(pl, "Buffered"):
            # kv slab's block index only changes with the batch axis -> one buffer suffices,
            # halving the dominant VMEM consumer (matters on v7x's 64 MiB).
            kv_kwargs["pipeline_mode"] = pl.Buffered(1)
        return pl.pallas_call(
            kernel,
            out_shape=jax.ShapeDtypeStruct((B, T, C), jnp.bfloat16),
            grid=(B, n_q),
            in_specs=[pl.BlockSpec((None, T, C), lambda b, q: (b, 0, 0), **kv_kwargs)],
            out_specs=pl.BlockSpec((None, tq, C), lambda b, q: (b, q, 0)),
            compiler_params=pltpu.CompilerParams(
                dimension_semantics=("parallel", "parallel"),
                vmem_limit_bytes=_VMEM_LIMIT),
        )

    try:
        return build(True)(qkv)
    except Exception:
        # TODO(synk): pipeline_mode=pl.Buffered(1) unsupported on this jax build; use default.
        return build(False)(qkv)


# ------------------------------- params / forward ---------------------------- #

def init_params(key, n_embd):
    """Synthetic init matching nn.Linear ((out, in) + bias) and nn.LayerNorm defaults."""
    def linear(k, fan_in, fan_out):
        kw, kb = jax.random.split(k)
        bound = 1.0 / math.sqrt(fan_in)
        w = jax.random.uniform(kw, (fan_out, fan_in), jnp.float32, -bound, bound)
        b = jax.random.uniform(kb, (fan_out,), jnp.float32, -bound, bound)
        return w, b

    ks = jax.random.split(key, 4)
    vw, vb = linear(ks[0], n_embd, n_embd)
    pw, pb = linear(ks[1], n_embd, n_embd)
    f1w, f1b = linear(ks[2], n_embd, 4 * n_embd)
    f2w, f2b = linear(ks[3], 4 * n_embd, n_embd)
    params = {
        "ln1_g": jnp.ones((n_embd,), jnp.float32), "ln1_b": jnp.zeros((n_embd,), jnp.float32),
        "ln2_g": jnp.ones((n_embd,), jnp.float32), "ln2_b": jnp.zeros((n_embd,), jnp.float32),
        "value_w": vw, "value_b": vb,
        "proj_w": pw, "proj_b": pb,
        "fc1_w": f1w, "fc1_b": f1b,
        "fc2_w": f2w, "fc2_b": f2b,
    }
    # Pre-packed (in, out)-transposed bf16 copies for the MXU kernels.
    for name in ("value", "proj", "fc1", "fc2"):
        params[name + "_w_t"] = params[name + "_w"].T.astype(jnp.bfloat16)
    # TODO(synk): key/query/weights_layer/weight_concat/fc/attn.mlp/attn.mlp_des/ln3/
    # mlp_des/input_mask exist in __init__ but are unused on the executed
    # (state=False) forward path, so they are not created.
    return params


def block_newsim_weight_forward(params, x_embedding, weight, state, des, *, n_head):
    if state:
        # TODO(synk): state=True path (stochastic similarity re-weighting in the attention
        # and the global-avg-pool -> ln3 -> mlp_des auxiliary head) is not implemented.
        raise NotImplementedError("only the deterministic state=False path is implemented")

    B, T, C = x_embedding.shape
    M = B * T
    x2d = x_embedding.reshape(M, C)

    # ---- x = x + attn(ln1(x)) ----
    qkv = pallas_ln_linear(                          # value(ln1(x)); q = k = v  (bf16)
        x2d, params["ln1_g"], params["ln1_b"],
        params["value_w_t"], params["value_b"], out_dtype=jnp.bfloat16)
    y = pallas_causal_attention(qkv.reshape(B, T, C), n_head)        # (B, T, C) bf16
    x1 = pallas_linear_bf16(                         # x + proj(y)      (resid_drop = id)
        y.reshape(M, C), params["proj_w_t"], params["proj_b"],
        residual=x2d, out_dtype=jnp.float32)

    # ---- x = x + mlp(ln2(x)) ----
    h = pallas_ln_linear(                            # gelu(fc1(ln2(x1)))  (bf16)
        x1, params["ln2_g"], params["ln2_b"],
        params["fc1_w_t"], params["fc1_b"], gelu=True, out_dtype=jnp.bfloat16)
    x2 = pallas_linear_bf16(                         # x1 + fc2(h)      (dropout = id)
        h, params["fc2_w_t"], params["fc2_b"],
        residual=x1, out_dtype=jnp.float32)

    return x2.reshape(B, T, C), weight, state, des


# --------------------------------- reference --------------------------------- #

def reference_forward(params, x, n_head):
    """Pure f32 JAX reference mirroring the PyTorch module (state=False)."""
    B, T, C = x.shape
    hd = C // n_head

    def ln(v, g, b):
        mu = v.mean(-1, keepdims=True)
        var = ((v - mu) ** 2).mean(-1, keepdims=True)
        return (v - mu) / jnp.sqrt(var + 1e-5) * g + b

    h1 = ln(x, params["ln1_g"], params["ln1_b"])
    qkv = h1 @ params["value_w"].T + params["value_b"]
    q = qkv.reshape(B, T, n_head, hd).transpose(0, 2, 1, 3)
    att = (q @ jnp.swapaxes(q, -1, -2)) / math.sqrt(hd)
    mask = jnp.tril(jnp.ones((T, T), jnp.float32))
    att = jnp.where(mask[None, None] == 0, -jnp.inf, att)
    att = jax.nn.softmax(att, axis=-1)
    y = (att @ q).transpose(0, 2, 1, 3).reshape(B, T, C)
    x1 = x + (y @ params["proj_w"].T + params["proj_b"])
    h2 = ln(x1, params["ln2_g"], params["ln2_b"])
    m = jax.nn.gelu(h2 @ params["fc1_w"].T + params["fc1_b"], approximate=False)
    x2 = x1 + (m @ params["fc2_w"].T + params["fc2_b"])
    return x2


# ----------------------------------- main ------------------------------------ #

if __name__ == "__main__":
    # Small config consistent with the module: n_embd % n_head == 0, T <= max_seqlen.
    B, T, C, n_head, n_auxil = 2, 8, 32, 4, 8

    key = jax.random.PRNGKey(0)
    kx, kw, kd, kp = jax.random.split(key, 4)
    x = jax.random.normal(kx, (B, T, C), dtype=jnp.float32)
    weight = jax.random.normal(kw, (B, T, C), dtype=jnp.float32)   # unused when state=False
    des = jax.random.normal(kd, (B, 1, n_auxil), dtype=jnp.float32)
    params = init_params(kp, C)

    x_out, w_out, state_out, des_out = block_newsim_weight_forward(
        params, x, weight, False, des, n_head=n_head)
    x_out = jax.block_until_ready(x_out)

    x_ref = reference_forward(params, x, n_head)
    assert x_out.shape == (B, T, C)
    assert bool(jnp.allclose(w_out, weight))
    assert bool(jnp.allclose(des_out, des))
    # bf16 MXU operands + approx reciprocal + tanh GELU -> compare loosely vs f32 reference.
    assert bool(jnp.allclose(x_out, x_ref, rtol=5e-2, atol=5e-2)), (
        "mismatch vs JAX reference, max abs err = "
        + str(float(jnp.max(jnp.abs(x_out - x_ref)))))

    print("KERNEL_OK")
</pallas_src>

<mosaic_0001>
module attributes {stable_mosaic.version = 11 : i64} {
  func.func @kernel(%arg0: i32, %arg1: i32, %arg2: memref<16x32xf32, #tpu.memory_space<vmem>>, %arg3: memref<1x32xf32, #tpu.memory_space<vmem>>, %arg4: memref<1x32xf32, #tpu.memory_space<vmem>>, %arg5: memref<32x32xbf16, #tpu.memory_space<vmem>>, %arg6: memref<1x32xf32, #tpu.memory_space<vmem>>, %arg7: memref<16x32xbf16, #tpu.memory_space<vmem>>, %arg8: memref<16x32xbf16, #tpu.memory_space<vmem>>) attributes {dimension_semantics = [#tpu.dimension_semantics<parallel>, #tpu.dimension_semantics<arbitrary>], iteration_bounds = array<i64: 1, 1>, scalar_prefetch = 0 : i64, scratch_operands = 1 : i64, tpu.core_type = #tpu.core_type<tc>, window_params = [{transform_indices = @transform_0, window_bounds = array<i64: 16, 32>}, {pipeline_mode = #tpu.pipeline_mode<synchronous>, transform_indices = @transform_1, window_bounds = array<i64: 1, 32>}, {pipeline_mode = #tpu.pipeline_mode<synchronous>, transform_indices = @transform_2, window_bounds = array<i64: 1, 32>}, {transform_indices = @transform_3, window_bounds = array<i64: 32, 32>}, {transform_indices = @transform_4, window_bounds = array<i64: 1, 32>}, {transform_indices = @transform_5, window_bounds = array<i64: 16, 32>}]} {
    %c0_i32 = arith.constant 0 : i32
    %0 = arith.cmpi eq, %arg1, %c0_i32 : i32
    %1 = arith.extui %0 : i1 to i32
    %c0_i32_0 = arith.constant 0 : i32
    %2 = arith.cmpi ne, %1, %c0_i32_0 : i32
    scf.if %2 {
      %c0_8 = arith.constant 0 : index
      %c0_9 = arith.constant 0 : index
      %11 = vector.load %arg2[%c0_8, %c0_9] : memref<16x32xf32, #tpu.memory_space<vmem>>, vector<16x32xf32>
      %cst_10 = arith.constant dense<0.000000e+00> : vector<16xf32>
      %12 = vector.multi_reduction <add>, %11, %cst_10 [1] : vector<16x32xf32> to vector<16xf32>
      %13 = vector.shape_cast %12 : vector<16xf32> to vector<16x1xf32>
      %cst_11 = arith.constant 3.200000e+01 : f32
      %14 = vector.broadcast %cst_11 : f32 to vector<16x1xf32>
      %15 = arith.divf %13, %14 : vector<16x1xf32>
      %16 = vector.broadcast %15 : vector<16x1xf32> to vector<16x32xf32>
      %17 = arith.subf %11, %16 : vector<16x32xf32>
      %18 = arith.mulf %17, %17 : vector<16x32xf32>
      %cst_12 = arith.constant dense<0.000000e+00> : vector<16xf32>
      %19 = vector.multi_reduction <add>, %18, %cst_12 [1] : vector<16x32xf32> to vector<16xf32>
      %20 = vector.shape_cast %19 : vector<16xf32> to vector<16x1xf32>
      %cst_13 = arith.constant 3.200000e+01 : f32
      %21 = vector.broadcast %cst_13 : f32 to vector<16x1xf32>
      %22 = arith.divf %20, %21 : vector<16x1xf32>
      %cst_14 = arith.constant 9.99999974E-6 : f32
      %23 = vector.broadcast %cst_14 : f32 to vector<16x1xf32>
      %24 = arith.addf %22, %23 : vector<16x1xf32>
      %25 = math.rsqrt %24 : vector<16x1xf32>
      %26 = vector.broadcast %25 : vector<16x1xf32> to vector<16x32xf32>
      %27 = arith.mulf %17, %26 : vector<16x32xf32>
      %c0_15 = arith.constant 0 : index
      %c0_16 = arith.constant 0 : index
      %28 = vector.load %arg3[%c0_15, %c0_16] : memref<1x32xf32, #tpu.memory_space<vmem>>, vector<1x32xf32>
      %29 = vector.broadcast %28 : vector<1x32xf32> to vector<16x32xf32>
      %30 = arith.mulf %27, %29 : vector<16x32xf32>
      %c0_17 = arith.constant 0 : index
      %c0_18 = arith.constant 0 : index
      %31 = vector.load %arg4[%c0_17, %c0_18] : memref<1x32xf32, #tpu.memory_space<vmem>>, vector<1x32xf32>
      %32 = vector.broadcast %31 : vector<1x32xf32> to vector<16x32xf32>
      %33 = arith.addf %30, %32 : vector<16x32xf32>
      %34 = arith.truncf %33 : vector<16x32xf32> to vector<16x32xbf16>
      %c0_19 = arith.constant 0 : index
      %c0_20 = arith.constant 0 : index
      %35 = vector.load %arg8[%c0_19, %c0_20] : memref<16x32xbf16, #tpu.memory_space<vmem>>, vector<16x32xbf16>
      tpu.vector_store %arg8[%c0_19, %c0_20], %34 {strides = array<i32>} : memref<16x32xbf16, #tpu.memory_space<vmem>>, vector<16x32xbf16>,
    } else {
    }
    %c0 = arith.constant 0 : index
    %c0_1 = arith.constant 0 : index
    %3 = vector.load %arg8[%c0, %c0_1] : memref<16x32xbf16, #tpu.memory_space<vmem>>, vector<16x32xbf16>
    %c0_2 = arith.constant 0 : index
    %c0_3 = arith.constant 0 : index
    %4 = vector.load %arg5[%c0_2, %c0_3] : memref<32x32xbf16, #tpu.memory_space<vmem>>, vector<32x32xbf16>
    %cst = arith.constant dense<0.000000e+00> : vector<16x32xf32>
    %5 = tpu.matmul %3, %4, %cst {dimension_numbers = #tpu.dot_dimension_numbers<[1], [0], [0], [1], [0, 0, 1, 1], [], []>} : vector<16x32xbf16>, vector<32x32xbf16>, vector<16x32xf32> -> vector<16x32xf32>
    %c0_4 = arith.constant 0 : index
    %c0_5 = arith.constant 0 : index
    %6 = vector.load %arg6[%c0_4, %c0_5] : memref<1x32xf32, #tpu.memory_space<vmem>>, vector<1x32xf32>
    %7 = vector.broadcast %6 : vector<1x32xf32> to vector<16x32xf32>
    %8 = arith.addf %5, %7 : vector<16x32xf32>
    %9 = arith.truncf %8 : vector<16x32xf32> to vector<16x32xbf16>
    %c0_6 = arith.constant 0 : index
    %c0_7 = arith.constant 0 : index
    %10 = vector.load %arg7[%c0_6, %c0_7] : memref<16x32xbf16, #tpu.memory_space<vmem>>, vector<16x32xbf16>
    tpu.vector_store %arg7[%c0_6, %c0_7], %9 {strides = array<i32>} : memref<16x32xbf16, #tpu.memory_space<vmem>>, vector<16x32xbf16>,
    return
  }
  func.func @transform_0(%arg0: i32, %arg1: i32) -> (i32, i32) {
    %c0_i32 = arith.constant 0 : i32
    %c0_i32_0 = arith.constant 0 : i32
    return %arg0, %c0_i32 : i32, i32
  }
  func.func @transform_1(%arg0: i32, %arg1: i32) -> (i32, i32) {
    %c0_i32 = arith.constant 0 : i32
    %c0_i32_0 = arith.constant 0 : i32
    %c0_i32_1 = arith.constant 0 : i32
    return %c0_i32, %c0_i32_0 : i32, i32
  }
  func.func @transform_2(%arg0: i32, %arg1: i32) -> (i32, i32) {
    %c0_i32 = arith.constant 0 : i32
    %c0_i32_0 = arith.constant 0 : i32
    %c0_i32_1 = arith.constant 0 : i32
    return %c0_i32, %c0_i32_0 : i32, i32
  }
  func.func @transform_3(%arg0: i32, %arg1: i32) -> (i32, i32) {
    %c0_i32 = arith.constant 0 : i32
    %c0_i32_0 = arith.constant 0 : i32
    return %c0_i32, %arg1 : i32, i32
  }
  func.func @transform_4(%arg0: i32, %arg1: i32) -> (i32, i32) {
    %c0_i32 = arith.constant 0 : i32
    %c0_i32_0 = arith.constant 0 : i32
    return %c0_i32, %arg1 : i32, i32
  }
  func.func @transform_5(%arg0: i32, %arg1: i32) -> (i32, i32) {
    %c0_i32 = arith.constant 0 : i32
    return %arg0, %arg1 : i32, i32
  }
}

</mosaic_0001>

<bundles_post_ra>
// kernel: tpu_custom_call.1
= control target key start
LH: loop header
LB: loop body
LE: loop exit
PB: predicated region body
PF: predicated region fallthrough
CT: control target
= control target key end

     0   :  { %10 = vsyncpa [#allocation4], 0  ;;  %s397_s0 = inlined_call_operand.hbm [shape: f32[16,32], index: 0, kind: input, shape index: {}]   ;;  %s398_s1 = inlined_call_operand.vmem [shape: f32[1,32], index: 1, kind: input, shape index: {}]   ;;  %s399_s2 = inlined_call_operand.vmem [shape: f32[1,32], index: 2, kind: input, shape index: {}]   ;;  %s400_s3 = inlined_call_operand.hbm [shape: bf16[32,32], index: 3, kind: input, shape index: {}]   ;;  %s401_s4 = inlined_call_operand.vmem [shape: f32[1,32], index: 4, kind: input, shape index: {}]   ;;  %s402_s5 = inlined_call_operand.hbm [shape: bf16[16,32], index: 5, kind: output, shape index: {}]  }
   0x1   :  { %11 = vsyncpa [#allocation7], 0 }
   0x2   :  { %12 = vsyncpa [#allocation5], 0  ;;  %s325_s18 = smov [#allocation3]  }
   0x3   :  { %s18_s19 = sshll.u32 %s325_s18, 4  ;;  %s19_s19 = int_to_ptr.vmem [resolvable:$true] %s18_s19 }
   0x4   :  { %s267_s20 = scalar_lea.vmem %s19_s19, 256  ;;  %p272_p1 = scmp.lt.s32.totalorder %s19_s19, %s19_s19 }
   0x5   :  { %p268_p0 = scmp.ne.s32.totalorder %s19_s19, %s267_s20  ;;  %p273_p2 = scmp.lt.s32.totalorder %s267_s20, %s267_s20 }
   0x7   :  { %p274_p3 = por %p273_p2, %p272_p1 }
   0x9   :  { %p275_p4 = pnand %p274_p3, %p268_p0 }
   0xb   :  { %278 = shalt.err (!%p275_p4)
}
   0xc   :  { %s326_s21 = smov 128   ;;  %s327_s22 = smov 8  }
   0xd   :  { %24 = dma.hbm_to_vmem [thread:$0]  %s397_s0, 256, %s19_s19, [#allocation4], %s326_s21, %s326_s21, %s327_s22  }
   0xe   :  { %s328_s25 = smov [#allocation6]  }
   0xf   :  { %s34_s26 = sshll.u32 %s328_s25, 4  ;;  %s35_s26 = int_to_ptr.vmem [resolvable:$true] %s34_s26 }
  0x10   :  { %s287_s27 = scalar_lea.vmem %s35_s26, 256  ;;  %p292_p6 = scmp.lt.s32.totalorder %s35_s26, %s35_s26 }
  0x11   :  { %p288_p5 = scmp.ne.s32.totalorder %s35_s26, %s287_s27  ;;  %p293_p7 = scmp.lt.s32.totalorder %s287_s27, %s287_s27 }
  0x13   :  { %p294_p8 = por %p293_p7, %p292_p6 }
  0x15   :  { %p295_p9 = pnand %p294_p8, %p288_p5 }
  0x17   :  { %298 = shalt.err (!%p295_p9)
}
  0x18   :  { %s329_s28 = smov 64   ;;  %s330_s29 = smov 4  }
  0x19   :  { %40 = dma.hbm_to_vmem [thread:$0]  %s400_s3, 256, %s35_s26, [#allocation7], %s329_s28, %s329_s28, %s330_s29  }
  0x1a   :  { %319 = dma.done.wait [#allocation4], 256  }
  0x1b   :  { %320 = vsyncadd [#allocation4], 4294967040 }
  0x1c   :  { %321 = dma.done.wait [#allocation7], 256  }
  0x1d   :  { %322 = vsyncadd [#allocation7], 4294967040  ;;  %vm56_vm0 = vcmask 261120   ;;  %v54_v0 = vld [vmem:[#allocation3] sm:$0xff]  ;;  %v55_v1 = vld [vmem:[#allocation3 + $0x8] sm:$0xff]  ;;  %v331_v15 = vmov 0.0  }
  0x1e   :  { %v57_v2 = vsel %vm56_vm0, %v54_v0, 0.0  ;;  %v60_v3 = vsel %vm56_vm0, %v55_v1, 0.0  ;;  %v252_v14 = vld [vmem:[#allocation6 + $0x8] sm:$0xff]   ;;  %235 = vmatprep.subr.bf16.mxu0 %v331_v15  ;;  %vm332_vm1 = vmmov 0   ;;  %v253_v16 = vld [vmem:[#allocation6] sm:$0xff]   ;;  %vm110_vm2 = vcmask 257024  }
  0x1f   :  { %58 = vadd.xlane.f32.xlu0 %v57_v2  ;;  %239 = vmatprep.mubr.msk.bf16.mxu0 %vm332_vm1, %v331_v15  ;;  %v217_v24 = vld [vmem:[%s398_s1] ss:$0 sm:$0xff] }
  0x20   :  { %236 = vmatpush3.bf16.msra.mxu0 %v252_v14  ;;  %v218_v26 = vld [vmem:[%s399_s2] ss:$0 sm:$0xff]  ;;  %s333_s2 = smov [#allocation8]  }
  0x21   :  { %237 = vmatprep.subr.bf16.mxu0 %v331_v15  ;;  %v221_v36 = vld [vmem:[%s401_s4] ss:$0 sm:$0xff]  ;;  %s204_s10 = sshll.u32 %s333_s2, 4  ;;  %s205_s10 = int_to_ptr.vmem [resolvable:$true] %s204_s10 }
  0x22   :  { %s299_s11 = scalar_lea.vmem %s205_s10, 128  ;;  %p304_p11 = scmp.lt.s32.totalorder %s205_s10, %s205_s10 }
  0x23   :  { %61 = vadd.xlane.f32.xlu0 %v60_v3  ;;  %p300_p10 = scmp.ne.s32.totalorder %s205_s10, %s299_s11  ;;  %p305_p12 = scmp.lt.s32.totalorder %s299_s11, %s299_s11 }
  0x24   :  { %238 = vmatpush3.bf16.msra.mxu0 %v253_v16 }
  0x25   :  { %p306_p13 = por %p305_p12, %p304_p11 }
  0x27   :  { %p307_p0 = pnand %p306_p13, %p300_p10 }
  0xa8   :  { %v59_v4 = vpop.xlane.xlu0 %58 }
  0xa9   :  { %v64_v5 = vmul.f32 0.03125, %v59_v4 }
  0xab   :  { %v66_v6 = vsub.f32 %v54_v0, %v64_v5 }
  0xac   :  { %v62_v7 = vpop.xlane.xlu0 %61 }
  0xad   :  { %v65_v8 = vmul.f32 0.03125, %v62_v7  ;;  %v68_v9 = vmul.f32 %v66_v6, %v66_v6 }
  0xaf   :  { %v67_v10 = vsub.f32 %v55_v1, %v65_v8  ;;  %v70_v11 = vsel %vm56_vm0, %v68_v9, 0.0 }
  0xb0   :  { %71 = vadd.xlane.f32.xlu1 %v70_v11 }
  0xb1   :  { %v69_v12 = vmul.f32 %v67_v10, %v67_v10 }
  0xb3   :  { %v73_v13 = vsel %vm56_vm0, %v69_v12, 0.0 }
  0xb4   :  { %74 = vadd.xlane.f32.xlu1 %v73_v13 }
 0x139   :  { %v72_v17 = vpop.xlane.xlu1 %71 }
 0x13a   :  { %v76_v18 = vmul.f32 0.03125, %v72_v17 }
 0x13c   :  { %v78_v19 = vadd.f32 1e-05, %v76_v18 }
 0x13d   :  { %v75_v20 = vpop.xlane.xlu1 %74 }
 0x13e   :  { %255 = vrsqrt.f32 %v78_v19  ;;  %v77_v21 = vmul.f32 0.03125, %v75_v20 }
 0x140   :  { %v79_v22 = vadd.f32 1e-05, %v77_v21 }
 0x142   :  { %257 = vrsqrt.f32 %v79_v22 }
 0x14b   :  { %v256_v23 = vpop.eup %255 }
 0x14c   :  { %v82_v25 = vmul.f32 %v256_v23, %v66_v6 }
 0x14e   :  { %v91_v27 = vmul.f32 %v217_v24, %v82_v25 }
 0x14f   :  { %v258_v28 = vpop.eup %257 }
 0x150   :  { %v100_v29 = vadd.f32 %v218_v26, %v91_v27  ;;  %v83_v30 = vmul.f32 %v258_v28, %v67_v10 }
 0x152   :  { %v228_v31 = vpack.c.bf16 %v100_v29, %v100_v29  ;;  %v92_v32 = vmul.f32 %v217_v24, %v83_v30 }
 0x154   :  { %111 = vst.msk [vmem:[#allocation2] sm:$0xf] %vm110_vm2, %v228_v31  ;;  %v101_v33 = vadd.f32 %v218_v26, %v92_v32 }
 0x156   :  { %v229_v34 = vpack.c.bf16 %v101_v33, %v101_v33 }
 0x158   :  { %112 = vst.msk [vmem:[#allocation2 + $0x4] sm:$0xf] %vm110_vm2, %v229_v34 }
 0x15f   :  { %v254_v35 = vld [vmem:[#allocation2] sm:$0xff]  }
 0x160   :  { %240 = vmatmul.mubr.msk.bf16.vlgmr.msra.gmra.mxu0 %vm56_vm0, %v254_v35 }
 0x220   :  { %v181_v37 = vpop.f32.mrf.mxu0 }
 0x221   :  { %v182_v38 = vadd.f32 %v221_v36, %v181_v37 }
 0x222   :  { %v241_v39 = vpop.f32.mrf.mxu0 }
 0x223   :  { %v230_v40 = vpack.c.bf16 %v182_v38, %v182_v38 }
 0x224   :  { %v184_v41 = vpop.f32.mrf.mxu0 }
 0x225   :  { %197 = vst.msk [vmem:[#allocation8] sm:$0xf] %vm110_vm2, %v230_v40  ;;  %v185_v42 = vadd.f32 %v221_v36, %v184_v41 }
 0x226   :  { %v242_v43 = vpop.f32.mrf.mxu0 }
 0x227   :  { %v231_v44 = vpack.c.bf16 %v185_v42, %v185_v42 }
 0x229   :  { %198 = vst.msk [vmem:[#allocation8 + $0x4] sm:$0xf] %vm110_vm2, %v231_v44 }
 0x22a   :  { %310 = shalt.err (!%p307_p0)
}
 0x22b   :  { %210 = dma.vmem_to_hbm [thread:$0]  %s205_s10, 128, %s402_s5, [#allocation5], %s329_s28, %s329_s28, %s330_s29  }
 0x22c   :  { %323 = dma.done.wait [#allocation5], 128  }
 0x22d   :  { %324 = vsyncadd [#allocation5], 4294967168 }
 0x22e   :  { %214 = vsyncpa [#allocation4], 1 }
 0x22f   :  { %215 = vsyncpa [#allocation7], 1 }
 0x230   :  { %216 = vsyncpa [#allocation5], 1 }

</bundles_post_ra>
